<compile_context>
chip_gen: v5e
topology: v5e:2x2
jax: 0.10.0
libtpu: 0.0.40
codegen_flags: <defaults>
</compile_context>

<pallas_src>
import jax
import jax.numpy as jnp
from jax import lax
from jax.experimental import pallas as pl
from jax.experimental.pallas import tpu as pltpu


def _make_lncc_kernel(C, D, HW, k_sum):
    inv_k = 1.0 / float(k_sum)
    kf = float(k_sum)

    def kernel(i_ref, j_ref, bd5_ref, bhw_ref, out_ref):
        Bd5 = bd5_ref[...]      # (5D, 5D) f32 block-diag band (box along D, per slab)
        Bhw = bhw_ref[...]      # (HW, HW) bf16 = kron(Bh, Bw) (box along H and W)

        Iv = i_ref[...][0]      # (C, D, HW) f32
        Jv = j_ref[...][0]

        # conv3d with an all-ones (1, C, kd, kh, kw) filter sums over the
        # channel axis first, then box-sums spatially.
        if C == 1:
            sI = Iv[0]
            sJ = Jv[0]
            sII = sI * sI
            sJJ = sJ * sJ
            sIJ = sI * sJ
        else:
            sI = jnp.sum(Iv, axis=0)
            sJ = jnp.sum(Jv, axis=0)
            sII = jnp.sum(Iv * Iv, axis=0)
            sJJ = jnp.sum(Jv * Jv, axis=0)
            sIJ = jnp.sum(Iv * Jv, axis=0)

        # Stack the five quantities along sublanes: one big MXU pass for the
        # (H, W) box mix instead of five skinny ones.
        stacked = jnp.concatenate([sI, sJ, sII, sJJ, sIJ], axis=0)        # (5D, HW)
        mixed_hw = jnp.dot(stacked.astype(jnp.bfloat16), Bhw,
                           preferred_element_type=jnp.float32)            # (5D, HW)
        # Tiny D-axis mix, block-diagonal so all five slabs go in one dot.
        mixed = jnp.dot(Bd5, mixed_hw, preferred_element_type=jnp.float32)

        I_sum = mixed[0 * D:1 * D]
        J_sum = mixed[1 * D:2 * D]
        II_sum = mixed[2 * D:3 * D]
        JJ_sum = mixed[3 * D:4 * D]
        IJ_sum = mixed[4 * D:5 * D]

        total = None
        for c in range(C):
            Ic = Iv[c] if C > 1 else sI
            Jc = Jv[c] if C > 1 else sJ
            # NOTE: reproduces the module exactly: I_u = I / k_sum (pointwise),
            # not the local window mean.
            I_u = Ic * inv_k
            J_u = Jc * inv_k
            cross = IJ_sum - I_sum * J_u - J_sum * I_u + (I_u * J_u) * kf
            I_var = II_sum - 2.0 * I_sum * I_u + (I_u * I_u) * kf
            J_var = JJ_sum - 2.0 * J_sum * J_u + (J_u * J_u) * kf
            loss = (cross * cross) / (I_var * J_var + 1e-5)
            total = loss if total is None else total + loss

        # Cheap sublane reduction per step; the store stays lane-dense (HW
        # lanes).  The cross-batch reduction happens in the wrapper.
        out_ref[...] = jnp.sum(total, axis=0, keepdims=True).reshape(1, 1, HW)

    return kernel


def cross_correlation_3d(y_true, y_pred, kernel=(9, 9, 9)):
    """Pallas implementation of CrossCorrelation3D.forward (returns -mean(lncc))."""
    N, C, D, H, W = y_true.shape
    kd, kh, kw = kernel
    pd, ph, pw = (kd - 1) // 2, (kh - 1) // 2, (kw - 1) // 2
    k_sum = kd * kh * kw
    HW = H * W

    # Deterministic "weights": the all-ones conv filter becomes 0/1 band
    # matrices (exactly representable in bf16).
    def band(L, r):
        idx = jnp.arange(L)
        return (jnp.abs(idx[:, None] - idx[None, :]) <= r).astype(jnp.float32)

    Bd = band(D, pd)                                                 # (D, D)
    Bd5 = jnp.kron(jnp.eye(5, dtype=jnp.float32), Bd)                # (5D, 5D) f32
    # Row-major pairing (h, w) -> h*W + w  =>  kron(Bh, Bw) on the fused axis.
    Bhw = jnp.kron(band(H, ph), band(W, pw)).astype(jnp.bfloat16)    # (HW, HW)

    # Lane-dense layout: H*W on lanes, D on sublanes.
    I3 = y_true.astype(jnp.float32).reshape(N, C, D, HW)
    J3 = y_pred.astype(jnp.float32).reshape(N, C, D, HW)

    kern = _make_lncc_kernel(C, D, HW, k_sum)

    # TODO(synk): for realistic volumes (e.g. 64^3) replace the dense
    # kron(Bh, Bw) matmul with a separable / roll-based box sum and raise
    # vmem_limit_bytes; the (HW, HW) band matrix scales as O((H*W)^2).
    partial = pl.pallas_call(
        kern,
        out_shape=jax.ShapeDtypeStruct((N, 1, HW), jnp.float32),
        grid=(N,),
        in_specs=[
            pl.BlockSpec((1, C, D, HW), lambda n: (n, 0, 0, 0)),
            pl.BlockSpec((1, C, D, HW), lambda n: (n, 0, 0, 0)),
            pl.BlockSpec((5 * D, 5 * D), lambda n: (0, 0)),
            pl.BlockSpec((HW, HW), lambda n: (0, 0)),
        ],
        out_specs=pl.BlockSpec((1, 1, HW), lambda n: (n, 0, 0)),
        compiler_params=pltpu.CompilerParams(dimension_semantics=("parallel",)),
    )(I3, J3, Bd5, Bhw)

    n_elems = N * C * D * H * W   # shape of the broadcasted per-voxel loss
    return -(jnp.sum(partial) / n_elems)


def lncc_reference(y_true, y_pred, kernel=(9, 9, 9)):
    """Pure-JAX reference matching the PyTorch module (for validation)."""
    kd, kh, kw = kernel
    C = y_true.shape[1]
    pad = ((0, 0), (0, 0), (kd // 2, kd // 2), (kh // 2, kh // 2), (kw // 2, kw // 2))
    k_sum = kd * kh * kw

    def boxsum(x):
        return lax.reduce_window(x, 0.0, lax.add, (1, C, kd, kh, kw),
                                 (1, 1, 1, 1, 1), pad)

    I, J = y_true, y_pred
    I_sum, J_sum = boxsum(I), boxsum(J)
    II_sum, JJ_sum, IJ_sum = boxsum(I * I), boxsum(J * J), boxsum(I * J)
    I_u, J_u = I / k_sum, J / k_sum
    cross = IJ_sum - I_sum * J_u - J_sum * I_u + I_u * J_u * k_sum
    I_var = II_sum - 2 * I_sum * I_u + I_u * I_u * k_sum
    J_var = JJ_sum - 2 * J_sum * J_u + J_u * J_u * k_sum
    return -jnp.mean((cross * cross) / (I_var * J_var + 1e-5))


if __name__ == "__main__":
    key = jax.random.PRNGKey(0)
    k1, k2 = jax.random.split(key)
    N, C, D, H, W = 2, 1, 16, 16, 16   # in_ch=1 (module default), small volume
    y_true = jax.random.normal(k1, (N, C, D, H, W), jnp.float32)
    # Correlated prediction -> LNCC is O(1), so the tolerance check is meaningful.
    y_pred = y_true + 0.3 * jax.random.normal(k2, (N, C, D, H, W), jnp.float32)

    loss = jax.jit(cross_correlation_3d)(y_true, y_pred)
    loss = jax.block_until_ready(loss)

    ref = lncc_reference(y_true, y_pred)
    assert jnp.allclose(loss, ref, rtol=2e-3, atol=2e-3), (loss, ref)
    print("KERNEL_OK")
</pallas_src>

<mosaic_0001>
module attributes {stable_mosaic.version = 11 : i64} {
  func.func @kernel(%arg0: i32, %arg1: memref<1x1x16x256xf32, #tpu.memory_space<vmem>>, %arg2: memref<1x1x16x256xf32, #tpu.memory_space<vmem>>, %arg3: memref<80x80xf32, #tpu.memory_space<vmem>>, %arg4: memref<256x256xbf16, #tpu.memory_space<vmem>>, %arg5: memref<1x1x256xf32, #tpu.memory_space<vmem>>) attributes {dimension_semantics = [#tpu.dimension_semantics<parallel>], iteration_bounds = array<i64: 2>, scalar_prefetch = 0 : i64, scratch_operands = 0 : i64, tpu.core_type = #tpu.core_type<tc>, window_params = [{transform_indices = @transform_0, window_bounds = array<i64: 1, 1, 16, 256>}, {transform_indices = @transform_1, window_bounds = array<i64: 1, 1, 16, 256>}, {pipeline_mode = #tpu.pipeline_mode<synchronous>, transform_indices = @transform_2, window_bounds = array<i64: 80, 80>}, {pipeline_mode = #tpu.pipeline_mode<synchronous>, transform_indices = @transform_3, window_bounds = array<i64: 256, 256>}, {transform_indices = @transform_4, window_bounds = array<i64: 1, 1, 256>}]} {
    %c0 = arith.constant 0 : index
    %c0_0 = arith.constant 0 : index
    %0 = vector.load %arg3[%c0, %c0_0] : memref<80x80xf32, #tpu.memory_space<vmem>>, vector<80x80xf32>
    %c0_1 = arith.constant 0 : index
    %c0_2 = arith.constant 0 : index
    %1 = vector.load %arg4[%c0_1, %c0_2] : memref<256x256xbf16, #tpu.memory_space<vmem>>, vector<256x256xbf16>
    %c0_3 = arith.constant 0 : index
    %c0_4 = arith.constant 0 : index
    %c0_5 = arith.constant 0 : index
    %c0_6 = arith.constant 0 : index
    %2 = vector.load %arg1[%c0_3, %c0_4, %c0_5, %c0_6] : memref<1x1x16x256xf32, #tpu.memory_space<vmem>>, vector<1x1x16x256xf32>
    %3 = vector.shape_cast %2 : vector<1x1x16x256xf32> to vector<1x16x256xf32>
    %c0_7 = arith.constant 0 : index
    %c0_8 = arith.constant 0 : index
    %c0_9 = arith.constant 0 : index
    %c0_10 = arith.constant 0 : index
    %4 = vector.load %arg2[%c0_7, %c0_8, %c0_9, %c0_10] : memref<1x1x16x256xf32, #tpu.memory_space<vmem>>, vector<1x1x16x256xf32>
    %5 = vector.shape_cast %4 : vector<1x1x16x256xf32> to vector<1x16x256xf32>
    %6 = vector.shape_cast %3 : vector<1x16x256xf32> to vector<16x256xf32>
    %7 = vector.shape_cast %5 : vector<1x16x256xf32> to vector<16x256xf32>
    %8 = arith.mulf %6, %6 : vector<16x256xf32>
    %9 = arith.mulf %7, %7 : vector<16x256xf32>
    %10 = arith.mulf %6, %7 : vector<16x256xf32>
    %11 = tpu.concatenate %6, %7, %8, %9, %10 in 0 : vector<16x256xf32>, vector<16x256xf32>, vector<16x256xf32>, vector<16x256xf32>, vector<16x256xf32> -> vector<80x256xf32>
    %12 = arith.truncf %11 : vector<80x256xf32> to vector<80x256xbf16>
    %cst = arith.constant dense<0.000000e+00> : vector<80x256xf32>
    %13 = tpu.matmul %12, %1, %cst {dimension_numbers = #tpu.dot_dimension_numbers<[1], [0], [0], [1], [0, 0, 1, 1], [], []>} : vector<80x256xbf16>, vector<256x256xbf16>, vector<80x256xf32> -> vector<80x256xf32>
    %cst_11 = arith.constant dense<0.000000e+00> : vector<80x256xf32>
    %14 = tpu.matmul %0, %13, %cst_11 {dimension_numbers = #tpu.dot_dimension_numbers<[1], [0], [0], [1], [0, 0, 1, 1], [], []>} : vector<80x80xf32>, vector<80x256xf32>, vector<80x256xf32> -> vector<80x256xf32>
    %15 = vector.extract_strided_slice %14 {offsets = [0, 0], sizes = [16, 256], strides = [1, 1]} : vector<80x256xf32> to vector<16x256xf32>
    %16 = vector.extract_strided_slice %14 {offsets = [16, 0], sizes = [16, 256], strides = [1, 1]} : vector<80x256xf32> to vector<16x256xf32>
    %17 = vector.extract_strided_slice %14 {offsets = [32, 0], sizes = [16, 256], strides = [1, 1]} : vector<80x256xf32> to vector<16x256xf32>
    %18 = vector.extract_strided_slice %14 {offsets = [48, 0], sizes = [16, 256], strides = [1, 1]} : vector<80x256xf32> to vector<16x256xf32>
    %19 = vector.extract_strided_slice %14 {offsets = [64, 0], sizes = [16, 256], strides = [1, 1]} : vector<80x256xf32> to vector<16x256xf32>
    %cst_12 = arith.constant 0.00137174211 : f32
    %20 = vector.broadcast %cst_12 : f32 to vector<16x256xf32>
    %21 = arith.mulf %6, %20 : vector<16x256xf32>
    %cst_13 = arith.constant 0.00137174211 : f32
    %22 = vector.broadcast %cst_13 : f32 to vector<16x256xf32>
    %23 = arith.mulf %7, %22 : vector<16x256xf32>
    %24 = arith.mulf %15, %23 : vector<16x256xf32>
    %25 = arith.subf %19, %24 : vector<16x256xf32>
    %26 = arith.mulf %16, %21 : vector<16x256xf32>
    %27 = arith.subf %25, %26 : vector<16x256xf32>
    %28 = arith.mulf %21, %23 : vector<16x256xf32>
    %cst_14 = arith.constant 7.290000e+02 : f32
    %29 = vector.broadcast %cst_14 : f32 to vector<16x256xf32>
    %30 = arith.mulf %28, %29 : vector<16x256xf32>
    %31 = arith.addf %27, %30 : vector<16x256xf32>
    %cst_15 = arith.constant 2.000000e+00 : f32
    %32 = vector.broadcast %cst_15 : f32 to vector<16x256xf32>
    %33 = arith.mulf %32, %15 : vector<16x256xf32>
    %34 = arith.mulf %33, %21 : vector<16x256xf32>
    %35 = arith.subf %17, %34 : vector<16x256xf32>
    %36 = arith.mulf %21, %21 : vector<16x256xf32>
    %cst_16 = arith.constant 7.290000e+02 : f32
    %37 = vector.broadcast %cst_16 : f32 to vector<16x256xf32>
    %38 = arith.mulf %36, %37 : vector<16x256xf32>
    %39 = arith.addf %35, %38 : vector<16x256xf32>
    %cst_17 = arith.constant 2.000000e+00 : f32
    %40 = vector.broadcast %cst_17 : f32 to vector<16x256xf32>
    %41 = arith.mulf %40, %16 : vector<16x256xf32>
    %42 = arith.mulf %41, %23 : vector<16x256xf32>
    %43 = arith.subf %18, %42 : vector<16x256xf32>
    %44 = arith.mulf %23, %23 : vector<16x256xf32>
    %cst_18 = arith.constant 7.290000e+02 : f32
    %45 = vector.broadcast %cst_18 : f32 to vector<16x256xf32>
    %46 = arith.mulf %44, %45 : vector<16x256xf32>
    %47 = arith.addf %43, %46 : vector<16x256xf32>
    %48 = arith.mulf %31, %31 : vector<16x256xf32>
    %49 = arith.mulf %39, %47 : vector<16x256xf32>
    %cst_19 = arith.constant 9.99999974E-6 : f32
    %50 = vector.broadcast %cst_19 : f32 to vector<16x256xf32>
    %51 = arith.addf %49, %50 : vector<16x256xf32>
    %52 = arith.divf %48, %51 : vector<16x256xf32>
    %cst_20 = arith.constant dense<0.000000e+00> : vector<256xf32>
    %53 = vector.multi_reduction <add>, %52, %cst_20 [0] : vector<16x256xf32> to vector<256xf32>
    %54 = vector.shape_cast %53 : vector<256xf32> to vector<1x256xf32>
    %55 = vector.shape_cast %54 : vector<1x256xf32> to vector<1x1x256xf32>
    %c0_21 = arith.constant 0 : index
    %c0_22 = arith.constant 0 : index
    %c0_23 = arith.constant 0 : index
    %56 = vector.load %arg5[%c0_21, %c0_22, %c0_23] : memref<1x1x256xf32, #tpu.memory_space<vmem>>, vector<1x1x256xf32>
    tpu.vector_store %arg5[%c0_21, %c0_22, %c0_23], %55 {strides = array<i32>} : memref<1x1x256xf32, #tpu.memory_space<vmem>>, vector<1x1x256xf32>,
    return
  }
  func.func @transform_0(%arg0: i32) -> (i32, i32, i32, i32) {
    %c0_i32 = arith.constant 0 : i32
    %c0_i32_0 = arith.constant 0 : i32
    %c0_i32_1 = arith.constant 0 : i32
    %c0_i32_2 = arith.constant 0 : i32
    return %arg0, %c0_i32, %c0_i32_0, %c0_i32_1 : i32, i32, i32, i32
  }
  func.func @transform_1(%arg0: i32) -> (i32, i32, i32, i32) {
    %c0_i32 = arith.constant 0 : i32
    %c0_i32_0 = arith.constant 0 : i32
    %c0_i32_1 = arith.constant 0 : i32
    %c0_i32_2 = arith.constant 0 : i32
    return %arg0, %c0_i32, %c0_i32_0, %c0_i32_1 : i32, i32, i32, i32
  }
  func.func @transform_2(%arg0: i32) -> (i32, i32) {
    %c0_i32 = arith.constant 0 : i32
    %c0_i32_0 = arith.constant 0 : i32
    %c0_i32_1 = arith.constant 0 : i32
    return %c0_i32, %c0_i32_0 : i32, i32
  }
  func.func @transform_3(%arg0: i32) -> (i32, i32) {
    %c0_i32 = arith.constant 0 : i32
    %c0_i32_0 = arith.constant 0 : i32
    %c0_i32_1 = arith.constant 0 : i32
    return %c0_i32, %c0_i32_0 : i32, i32
  }
  func.func @transform_4(%arg0: i32) -> (i32, i32, i32) {
    %c0_i32 = arith.constant 0 : i32
    %c0_i32_0 = arith.constant 0 : i32
    %c0_i32_1 = arith.constant 0 : i32
    return %arg0, %c0_i32, %c0_i32_0 : i32, i32, i32
  }
}

</mosaic_0001>

<bundles_post_ra>
// kernel: cross_correlation_3d.1
= control target key start
LH: loop header
LB: loop body
LE: loop exit
PB: predicated region body
PF: predicated region fallthrough
CT: control target
= control target key end

     0   :  { %s1218_s15 = smov 0   ;;  %s1689_s0 = inlined_call_operand.vmem [shape: f32[2,1,16,256], index: 0, kind: input, shape index: {}]   ;;  %s1690_s1 = inlined_call_operand.vmem [shape: f32[2,1,16,256], index: 1, kind: input, shape index: {}]   ;;  %s1691_s2 = inlined_call_operand.vmem [shape: f32[80,80], index: 2, kind: input, shape index: {}]   ;;  %s1692_s3 = inlined_call_operand.vmem [shape: bf16[256,256], index: 3, kind: input, shape index: {}]   ;;  %s1693_s4 = inlined_call_operand.vmem [shape: f32[2,1,256], index: 4, kind: output, shape index: {}]  }
   0x1 LB: > { %s955_s16 = sadd.s32 4294967295, %s1191_s15   ;;  %p959_p0 = scmp.ge.s32.totalorder %s1191_s15, 1  ;;  %s1191_s15 = sphi %s1218_s15, %s14_s15  }
   0x2   : > { %p172_p1 = scmp.lt.s32.totalorder %s1191_s15, 3 }
   0x4   : > { %p173_p2 = pnand %p959_p0, %p172_p1 }
   0x5   : > { %p202_p3 = scmp.lt.s32.totalorder (!%p173_p2), %s955_s16, 1 }
   0x6   : > { %176 = sbr.rel (%p173_p2) target bundleno = 475 (0x1db), region = 36 }
   0xb   : > { %v1023_v0 = vld [vmem:[%s1692_s3 + $0x70] sm:$0xf]  ;;  %v1132_v1 = vld [vmem:[%s1692_s3 + $0x74] sm:$0xf0]  ;;  %v1131_v5 = vld [vmem:[%s1692_s3 + $0x74] sm:$0xf] }
   0xc   : > { %v1087_v2 = vld [vmem:[%s1692_s3 + $0xf0] sm:$0xf]  ;;  %v1024_v3 = vor.u32 %v1132_v1, %v1023_v0  ;;  %v1148_v4 = vld [vmem:[%s1692_s3 + $0xf4] sm:$0xf0]  ;;  %v1025_v6 = vld [vmem:[%s1692_s3 + $0x78] sm:$0xf0] }
   0xd   : > { %v1088_v7 = vor.u32 %v1148_v4, %v1087_v2  ;;  %v1028_v8 = vor.u32 %v1131_v5, %v1025_v6  ;;  %v1147_v9 = vld [vmem:[%s1692_s3 + $0xf4] sm:$0xf]  ;;  %v1089_v10 = vld [vmem:[%s1692_s3 + $0xf8] sm:$0xf0]  ;;  %v1015_v11 = vld [vmem:[%s1692_s3 + $0x60] sm:$0xf] }
   0xe   : > { %448 = vmatpush.bf16.msra.mxu0 %v1024_v3  ;;  %v1092_v12 = vor.u32 %v1147_v9, %v1089_v10  ;;  %v1130_v13 = vld [vmem:[%s1692_s3 + $0x64] sm:$0xf0]  ;;  %v1079_v14 = vld [vmem:[%s1692_s3 + $0xe0] sm:$0xf]  ;;  %v1129_v18 = vld [vmem:[%s1692_s3 + $0x64] sm:$0xf] }
   0xf   : > { %v1146_v15 = vld [vmem:[%s1692_s3 + $0xe4] sm:$0xf0]  ;;  %482 = vmatpush.bf16.msra.mxu1 %v1088_v7  ;;  %516 = vmatpush.bf16.msra.mxu2 %v1028_v8  ;;  %v1016_v16 = vor.u32 %v1130_v13, %v1015_v11  ;;  %v1017_v19 = vld [vmem:[%s1692_s3 + $0x68] sm:$0xf0]  ;;  %v1145_v20 = vld [vmem:[%s1692_s3 + $0xe4] sm:$0xf] }
  0x10   : > { %v1080_v17 = vor.u32 %v1146_v15, %v1079_v14  ;;  %550 = vmatpush.bf16.msra.mxu3 %v1092_v12  ;;  %v1020_v21 = vor.u32 %v1129_v18, %v1017_v19  ;;  %v1081_v22 = vld [vmem:[%s1692_s3 + $0xe8] sm:$0xf0]  ;;  %v1007_v23 = vld [vmem:[%s1692_s3 + $0x50] sm:$0xf]  ;;  %v1128_v24 = vld [vmem:[%s1692_s3 + $0x54] sm:$0xf0] }
  0x11   : > { %v1084_v25 = vor.u32 %v1145_v20, %v1081_v22  ;;  %v1071_v26 = vld [vmem:[%s1692_s3 + $0xd0] sm:$0xf]  ;;  %v1144_v27 = vld [vmem:[%s1692_s3 + $0xd4] sm:$0xf0]  ;;  %v1127_v28 = vld [vmem:[%s1692_s3 + $0x54] sm:$0xf]  ;;  %v1008_v29 = vor.u32 %v1128_v24, %v1007_v23 }
  0x12   : > { %449 = vmatpush.bf16.msra.mxu0 %v1016_v16  ;;  %v1009_v30 = vld [vmem:[%s1692_s3 + $0x58] sm:$0xf0]  ;;  %v1143_v31 = vld [vmem:[%s1692_s3 + $0xd4] sm:$0xf]  ;;  %v1072_v33 = vor.u32 %v1144_v27, %v1071_v26  ;;  %v999_v35 = vld [vmem:[%s1692_s3 + $0x40] sm:$0xf] }
  0x13   : > { %v1073_v32 = vld [vmem:[%s1692_s3 + $0xd8] sm:$0xf0]  ;;  %483 = vmatpush.bf16.msra.mxu1 %v1080_v17  ;;  %517 = vmatpush.bf16.msra.mxu2 %v1020_v21  ;;  %v1012_v34 = vor.u32 %v1127_v28, %v1009_v30  ;;  %v1126_v36 = vld [vmem:[%s1692_s3 + $0x44] sm:$0xf0]  ;;  %v1063_v37 = vld [vmem:[%s1692_s3 + $0xc0] sm:$0xf] }
  0x14   : > { %551 = vmatpush.bf16.msra.mxu3 %v1084_v25  ;;  %v1076_v38 = vor.u32 %v1143_v31, %v1073_v32  ;;  %v1142_v39 = vld [vmem:[%s1692_s3 + $0xc4] sm:$0xf0]  ;;  %v1125_v40 = vld [vmem:[%s1692_s3 + $0x44] sm:$0xf]  ;;  %v1001_v41 = vld [vmem:[%s1692_s3 + $0x48] sm:$0xf0]  ;;  %v1000_v44 = vor.u32 %v1126_v36, %v999_v35 }
  0x15   : > { %v1141_v42 = vld [vmem:[%s1692_s3 + $0xc4] sm:$0xf]  ;;  %v1065_v43 = vld [vmem:[%s1692_s3 + $0xc8] sm:$0xf0]  ;;  %v1064_v45 = vor.u32 %v1142_v39, %v1063_v37  ;;  %v1004_v46 = vor.u32 %v1125_v40, %v1001_v41  ;;  %v991_v47 = vld [vmem:[%s1692_s3 + $0x30] sm:$0xf] }
  0x16   : > { %450 = vmatpush.bf16.msra.mxu0 %v1008_v29  ;;  %v1124_v48 = vld [vmem:[%s1692_s3 + $0x34] sm:$0xf0]  ;;  %v1055_v49 = vld [vmem:[%s1692_s3 + $0xb0] sm:$0xf]  ;;  %v1068_v50 = vor.u32 %v1141_v42, %v1065_v43  ;;  %v1123_v52 = vld [vmem:[%s1692_s3 + $0x34] sm:$0xf] }
  0x17   : > { %484 = vmatpush.bf16.msra.mxu1 %v1072_v33  ;;  %518 = vmatpush.bf16.msra.mxu2 %v1012_v34  ;;  %v1140_v51 = vld [vmem:[%s1692_s3 + $0xb4] sm:$0xf0]  ;;  %v993_v53 = vld [vmem:[%s1692_s3 + $0x38] sm:$0xf0]  ;;  %v1139_v54 = vld [vmem:[%s1692_s3 + $0xb4] sm:$0xf]  ;;  %v992_v56 = vor.u32 %v1124_v48, %v991_v47 }
  0x18   : > { %552 = vmatpush.bf16.msra.mxu3 %v1076_v38  ;;  %v1057_v55 = vld [vmem:[%s1692_s3 + $0xb8] sm:$0xf0]  ;;  %v1056_v57 = vor.u32 %v1140_v51, %v1055_v49  ;;  %v996_v58 = vor.u32 %v1123_v52, %v993_v53  ;;  %v983_v59 = vld [vmem:[%s1692_s3 + $0x20] sm:$0xf]  ;;  %v1122_v60 = vld [vmem:[%s1692_s3 + $0x24] sm:$0xf0] }
  0x19   : > { %v1047_v61 = vld [vmem:[%s1692_s3 + $0xa0] sm:$0xf]  ;;  %v1060_v62 = vor.u32 %v1139_v54, %v1057_v55  ;;  %v1138_v63 = vld [vmem:[%s1692_s3 + $0xa4] sm:$0xf0]  ;;  %v1121_v0 = vld [vmem:[%s1692_s3 + $0x24] sm:$0xf]  ;;  %v984_v4 = vor.u32 %v1122_v60, %v983_v59 }
  0x1a   : > { %451 = vmatpush.bf16.msra.mxu0 %v1000_v44  ;;  %v985_v1 = vld [vmem:[%s1692_s3 + $0x28] sm:$0xf0]  ;;  %v1137_v2 = vld [vmem:[%s1692_s3 + $0xa4] sm:$0xf]  ;;  %v975_v5 = vld [vmem:[%s1692_s3 + $0x10] sm:$0xf]  ;;  %v1048_v6 = vor.u32 %v1138_v63, %v1047_v61 }
  0x1b   : > { %485 = vmatpush.bf16.msra.mxu1 %v1064_v45  ;;  %519 = vmatpush.bf16.msra.mxu2 %v1004_v46  ;;  %v1049_v3 = vld [vmem:[%s1692_s3 + $0xa8] sm:$0xf0]  ;;  %v988_v7 = vor.u32 %v1121_v0, %v985_v1  ;;  %v1120_v8 = vld [vmem:[%s1692_s3 + $0x14] sm:$0xf0]  ;;  %v1039_v9 = vld [vmem:[%s1692_s3 + $0x90] sm:$0xf] }
  0x1c   : > { %553 = vmatpush.bf16.msra.mxu3 %v1068_v50  ;;  %v1136_v10 = vld [vmem:[%s1692_s3 + $0x94] sm:$0xf0]  ;;  %v1052_v11 = vor.u32 %v1137_v2, %v1049_v3  ;;  %v1119_v12 = vld [vmem:[%s1692_s3 + $0x14] sm:$0xf]  ;;  %v977_v13 = vld [vmem:[%s1692_s3 + $0x18] sm:$0xf0]  ;;  %v976_v16 = vor.u32 %v1120_v8, %v975_v5 }
  0x1d   : > { %v1135_v14 = vld [vmem:[%s1692_s3 + $0x94] sm:$0xf]  ;;  %v1041_v15 = vld [vmem:[%s1692_s3 + $0x98] sm:$0xf0]  ;;  %v967_v17 = vld [vmem:[%s1692_s3] sm:$0xf]  ;;  %v1040_v18 = vor.u32 %v1136_v10, %v1039_v9  ;;  %v980_v19 = vor.u32 %v1119_v12, %v977_v13 }
  0x1e   : > { %452 = vmatpush.bf16.msra.mxu0 %v992_v56  ;;  %s1699_s16 = smov (!%p202_p3, %s955_s16), 1  ;;  %v1118_v20 = vld [vmem:[%s1692_s3 + $0x4] sm:$0xf0]  ;;  %v1031_v21 = vld [vmem:[%s1692_s3 + $0x80] sm:$0xf]  ;;  %v1044_v23 = vor.u32 %v1135_v14, %v1041_v15  ;;  %vm584_vm0 = vcmask 654336  }
  0x1f   : > { %486 = vmatpush.bf16.msra.mxu1 %v1056_v57  ;;  %520 = vmatpush.bf16.msra.mxu2 %v996_v58  ;;  %v1134_v22 = vld [vmem:[%s1692_s3 + $0x84] sm:$0xf0]  ;;  %v1117_v24 = vld [vmem:[%s1692_s3 + $0x4] sm:$0xf]  ;;  %v969_v25 = vld [vmem:[%s1692_s3 + $0x8] sm:$0xf0]  ;;  %v968_v28 = vor.u32 %v1118_v20, %v967_v17 }
  0x20   : > { %554 = vmatpush.bf16.msra.mxu3 %v1060_v62  ;;  %s1115_s21 = sshll.u32 %s1699_s16, 5  ;;  %v1133_v26 = vld [vmem:[%s1692_s3 + $0x84] sm:$0xf]  ;;  %v1033_v27 = vld [vmem:[%s1692_s3 + $0x88] sm:$0xf0]  ;;  %v1032_v31 = vor.u32 %v1134_v22, %v1031_v21  ;;  %v972_v32 = vor.u32 %v1117_v24, %v969_v25 }
  0x21   : > { %s206_s28 = scalar_lea.vmem %s1689_s0, %s1115_s21  ;;  %v1036_v35 = vor.u32 %v1133_v26, %v1033_v27  ;;  %s211_s5 = scalar_lea.vmem %s1690_s1, %s1115_s21 }
  0x22   : > { %453 = vmatpush.bf16.msra.mxu0 %v984_v4  ;;  %v1428_v29 = vld [vmem:[%s206_s28] sm:$0xff]  ;;  %v1430_v30 = vld [vmem:[%s206_s28 + $0x10] sm:$0xff]  ;;  %v1432_v33 = vld [vmem:[%s206_s28 + $0x8] sm:$0xff] }
  0x23   : > { %487 = vmatpush.bf16.msra.mxu1 %v1048_v6  ;;  %521 = vmatpush.bf16.msra.mxu2 %v988_v7  ;;  %v1434_v34 = vld [vmem:[%s206_s28 + $0x18] sm:$0xff]  ;;  %v278_v36 = vpack.c.bf16 %v1430_v30, %v1428_v29  ;;  %v1443_v38 = vld [vmem:[%s211_s5] sm:$0xff]  ;;  %v1445_v39 = vld [vmem:[%s211_s5 + $0x10] sm:$0xff]  ;;  %v266_v44 = vmul.f32 %v1428_v29, %v1428_v29  ;;  %v268_v45 = vmul.f32 %v1430_v30, %v1430_v30  ;;  %s964_s28 = sshll.u32 %s1699_s16, 1 }
  0x24   : > { %555 = vmatpush.bf16.msra.mxu3 %v1052_v11  ;;  %v279_v37 = vpack.c.bf16 %v1434_v34, %v1432_v33  ;;  %v1447_v40 = vld [vmem:[%s211_s5 + $0x8] sm:$0xff]  ;;  %v1449_v41 = vld [vmem:[%s211_s5 + $0x18] sm:$0xff]  ;;  %v280_v42 = vpack.c.bf16 %v1445_v39, %v1443_v38  ;;  %v267_v46 = vmul.f32 %v1432_v33, %v1432_v33  ;;  %v269_v47 = vmul.f32 %v1434_v34, %v1434_v34  ;;  %s215_s5 = scalar_lea.vmem %s1693_s4, %s964_s28 }
  0x25   : > { %v281_v43 = vpack.c.bf16 %v1449_v41, %v1447_v40  ;;  %v282_v48 = vpack.c.bf16 %v268_v45, %v266_v44  ;;  %v270_v50 = vmul.f32 %v1443_v38, %v1443_v38  ;;  %v272_v51 = vmul.f32 %v1445_v39, %v1445_v39 }
  0x26   : > { %454 = vmatpush.bf16.msra.mxu0 %v976_v16  ;;  %v283_v49 = vpack.c.bf16 %v269_v47, %v267_v46  ;;  %v271_v52 = vmul.f32 %v1447_v40, %v1447_v40  ;;  %v273_v53 = vmul.f32 %v1449_v41, %v1449_v41  ;;  %v274_v56 = vmul.f32 %v1443_v38, %v1428_v29 }
  0x27   : > { %488 = vmatpush.bf16.msra.mxu1 %v1040_v18  ;;  %522 = vmatpush.bf16.msra.mxu2 %v980_v19  ;;  %v284_v54 = vpack.c.bf16 %v272_v51, %v270_v50  ;;  %v276_v57 = vmul.f32 %v1445_v39, %v1430_v30  ;;  %v275_v58 = vmul.f32 %v1447_v40, %v1432_v33 }
  0x28   : > { %556 = vmatpush.bf16.msra.mxu3 %v1044_v23  ;;  %v285_v55 = vpack.c.bf16 %v273_v53, %v271_v52  ;;  %v277_v59 = vmul.f32 %v1449_v41, %v1434_v34 }
  0x29   : > { %v286_v60 = vpack.c.bf16 %v276_v57, %v274_v56 }
  0x2a   : > { %455 = vmatpush.bf16.msra.mxu0 %v968_v28  ;;  %v287_v61 = vpack.c.bf16 %v277_v59, %v275_v58 }
  0x2b   : > { %489 = vmatpush.bf16.msra.mxu1 %v1032_v31  ;;  %523 = vmatpush.bf16.msra.mxu2 %v972_v32 }
  0x2c   : > { %557 = vmatpush.bf16.msra.mxu3 %v1036_v35 }
  0x2d   : > { %456 = vmatmul.bf16.vlgmr.msra.gmra.mxu0 %v278_v36 }
  0x2e   : > { %490 = vmatmul.bf16.vlgmr.msra.gmra.mxu1 %v279_v37  ;;  %524 = vmatmul.bf16.vlgmr.msra.gmra.mxu2 %v278_v36 }
  0x2f   : > { %558 = vmatmul.bf16.vlgmr.msra.gmra.mxu3 %v279_v37 }
  0x3d   : > { %461 = vmatmul.bf16.gmra.mxu0 %v280_v42 }
  0x3e   : > { %495 = vmatmul.bf16.gmra.mxu1 %v281_v43  ;;  %529 = vmatmul.bf16.gmra.mxu2 %v280_v42 }
  0x3f   : > { %563 = vmatmul.bf16.gmra.mxu3 %v281_v43 }
  0x4d   : > { %466 = vmatmul.bf16.gmra.mxu0 %v282_v48 }
  0x4e   : > { %500 = vmatmul.bf16.gmra.mxu1 %v283_v49  ;;  %534 = vmatmul.bf16.gmra.mxu2 %v282_v48 }
  0x4f   : > { %568 = vmatmul.bf16.gmra.mxu3 %v283_v49 }
  0x5d   : > { %471 = vmatmul.bf16.gmra.mxu0 %v284_v54 }
  0x5e   : > { %505 = vmatmul.bf16.gmra.mxu1 %v285_v55  ;;  %539 = vmatmul.bf16.gmra.mxu2 %v284_v54 }
  0x5f   : > { %573 = vmatmul.bf16.gmra.mxu3 %v285_v55 }
  0x6d   : > { %476 = vmatmul.bf16.gmra.mxu0 %v286_v60 }
  0x6e   : > { %510 = vmatmul.bf16.gmra.mxu1 %v287_v61  ;;  %544 = vmatmul.bf16.gmra.mxu2 %v286_v60 }
  0x6f   : > { %578 = vmatmul.bf16.gmra.mxu3 %v287_v61 }
  0xaa   : > { %v457_v62 = vpop.f32.mrf.mxu0 }
  0xab   : > { %v491_v63 = vpop.f32.mrf.mxu1 }
  0xac   : > { %v1479_v0 = vadd.f32 %v491_v63, %v457_v62 }
  0xb1   : > { %v525_v1 = vpop.f32.mrf.mxu2 }
  0xb2   : > { %v559_v2 = vpop.f32.mrf.mxu3  ;;  %v459_v3 = vpop.f32.mrf.mxu0 }
  0xb3   : > { %v1481_v4 = vadd.f32 %v559_v2, %v525_v1  ;;  %v493_v5 = vpop.f32.mrf.mxu1 }
  0xb4   : > { %v1483_v6 = vadd.f32 %v493_v5, %v459_v3  ;;  %v216_v3 = vld [vmem:[%s1691_s2] sm:$0xff]  ;;  %v221_v5 = vld [vmem:[%s1691_s2 + $0x28] sm:$0xff] }
  0xb9   : > { %v527_v7 = vpop.f32.mrf.mxu2 }
  0xba   : > { %v561_v8 = vpop.f32.mrf.mxu3  ;;  %v462_v9 = vpop.f32.mrf.mxu0 }
  0xbb   : > { %v1485_v10 = vadd.f32 %v561_v8, %v527_v7  ;;  %v496_v11 = vpop.f32.mrf.mxu1  ;;  %v223_v7 = vld [vmem:[%s1691_s2 + $0x38] sm:$0xff] }
  0xbc   : > { %v1487_v12 = vadd.f32 %v496_v11, %v462_v9  ;;  %v219_v8 = vld [vmem:[%s1691_s2 + $0x18] sm:$0xff]  ;;  %v224_v9 = vld [vmem:[%s1691_s2 + $0x40] sm:$0xff]  ;;  %v225_v11 = vld [vmem:[%s1691_s2 + $0x48] sm:$0xff] }
  0xc1   : > { %v530_v13 = vpop.f32.mrf.mxu2 }
  0xc2   : > { %v564_v14 = vpop.f32.mrf.mxu3  ;;  %v464_v15 = vpop.f32.mrf.mxu0 }
  0xc3   : > { %v1489_v16 = vadd.f32 %v564_v14, %v530_v13  ;;  %v498_v17 = vpop.f32.mrf.mxu1  ;;  %v713_v13 = vmul.f32 0.0013717421, %v1443_v38 }
  0xc4   : > { %v499_v61 = vadd.f32 %v498_v17, %v464_v15  ;;  %v1565_v17 = vmul.f32 0.0013717421, %v1447_v40  ;;  %v1586_v40 = vmul.f32 0.0013717421, %v1434_v34 }
  0xc9   : > { %v1491_v18 = vpop.f32.mrf.mxu2 }
  0xca   : > { %v1493_v19 = vpop.f32.mrf.mxu3  ;;  %v467_v20 = vpop.f32.mrf.mxu0 }
  0xcb   : > { %v501_v21 = vpop.f32.mrf.mxu1  ;;  %v567_v2 = vadd.f32 %v1493_v19, %v1491_v18 }
  0xcc   : > { %v502_v59 = vadd.f32 %v501_v21, %v467_v20  ;;  %v1574_v21 = vmul.f32 0.0013717421, %v1430_v30 }
  0xd1   : > { %v535_v22 = vpop.f32.mrf.mxu2 }
  0xd2   : > { %v569_v23 = vpop.f32.mrf.mxu3  ;;  %v469_v24 = vpop.f32.mrf.mxu0 }
  0xd3   : > { %v503_v25 = vpop.f32.mrf.mxu1  ;;  %v570_v1 = vadd.f32 %v569_v23, %v535_v22  ;;  %v1589_v22 = vmul.f32 0.0013717421, %v1449_v41  ;;  %v759_v41 = vmul.f32 %v1574_v21, %v1574_v21 }
  0xd4   : > { %v504_v57 = vadd.f32 %v503_v25, %v469_v24 }
  0xd9   : > { %v537_v26 = vpop.f32.mrf.mxu2 }
  0xda   : > { %v571_v27 = vpop.f32.mrf.mxu3  ;;  %v472_v28 = vpop.f32.mrf.mxu0 }
  0xdb   : > { %v506_v31 = vpop.f32.mrf.mxu1  ;;  %v572_v63 = vadd.f32 %v571_v27, %v537_v26 }
  0xdc   : > { %v507_v54 = vadd.f32 %v506_v31, %v472_v28 }
  0xe1   : > { %v540_v32 = vpop.f32.mrf.mxu2 }
  0xe2   : > { %v574_v35 = vpop.f32.mrf.mxu3  ;;  %v474_v36 = vpop.f32.mrf.mxu0 }
  0xe3   : > { %v508_v37 = vpop.f32.mrf.mxu1  ;;  %v575_v62 = vadd.f32 %v574_v35, %v540_v32  ;;  %v760_v35 = vmul.f32 %v1586_v40, %v1586_v40 }
  0xe4   : > { %v509_v52 = vadd.f32 %v508_v37, %v474_v36  ;;  %v782_v36 = vmul.f32 %v1565_v17, %v1565_v17 }
  0xe9   : > { %v542_v42 = vpop.f32.mrf.mxu2 }
  0xea   : > { %v576_v43 = vpop.f32.mrf.mxu3  ;;  %v477_v44 = vpop.f32.mrf.mxu0 }
  0xeb   : > { %v511_v45 = vpop.f32.mrf.mxu1  ;;  %v577_v60 = vadd.f32 %v576_v43, %v542_v42 }
  0xec   : > { %v512_v51 = vadd.f32 %v511_v45, %v477_v44  ;;  %v781_v44 = vmul.f32 %v713_v13, %v713_v13 }
  0xf1   : > { %v545_v46 = vpop.f32.mrf.mxu2 }
  0xf2   : > { %v579_v47 = vpop.f32.mrf.mxu3  ;;  %v479_v48 = vpop.f32.mrf.mxu0 }
  0xf3   : > { %v513_v49 = vpop.f32.mrf.mxu1  ;;  %v580_v58 = vadd.f32 %v579_v47, %v545_v46 }
  0xf4   : > { %v514_v50 = vadd.f32 %v513_v49, %v479_v48  ;;  %v763_v49 = vmul.f32 729.0, %v759_v41 }
  0xf6   : > { %621 = vmatpush.msrb.mxu0 %v514_v50  ;;  %1149 = vmatpush.msrb.mxu2 %v514_v50 }
  0xf8   : > { %622 = vmatpush.msrb.mxu0 %v512_v51  ;;  %1150 = vmatpush.msrb.mxu2 %v512_v51  ;;  %v764_v51 = vmul.f32 729.0, %v760_v35 }
  0xf9   : > { %v547_v53 = vpop.f32.mrf.mxu2 }
  0xfa   : > { %v581_v55 = vpop.f32.mrf.mxu3  ;;  %623 = vmatpush.msrb.mxu0 %v509_v52  ;;  %1151 = vmatpush.msrb.mxu2 %v509_v52  ;;  %v786_v52 = vmul.f32 729.0, %v782_v36 }
  0xfb   : > { %v582_v56 = vadd.f32 %v581_v55, %v547_v53 }
  0xfc   : > { %624 = vmatpush.msrb.mxu0 %v507_v54  ;;  %1152 = vmatpush.msrb.mxu2 %v507_v54 }
  0xfd   : > { %668 = vmatpush.msrb.mxu1 %v582_v56  ;;  %1159 = vmatpush.msrb.mxu3 %v582_v56 }
  0xfe   : > { %625 = vmatpush.msrb.mxu0 %v504_v57  ;;  %1153 = vmatpush.msrb.mxu2 %v504_v57  ;;  %v785_v57 = vmul.f32 729.0, %v781_v44 }
  0xff   : > { %669 = vmatpush.msrb.mxu1 %v580_v58  ;;  %1160 = vmatpush.msrb.mxu3 %v580_v58 }
 0x100   : > { %626 = vmatpush.msrb.mxu0 %v502_v59  ;;  %1154 = vmatpush.msrb.mxu2 %v502_v59  ;;  %v784_v59 = vmul.f32 %v1589_v22, %v1589_v22 }
 0x101   : > { %670 = vmatpush.msrb.mxu1 %v577_v60  ;;  %1161 = vmatpush.msrb.mxu3 %v577_v60 }
 0x102   : > { %627 = vmatpush.msrb.mxu0 %v499_v61  ;;  %1155 = vmatpush.msrb.mxu2 %v499_v61 }
 0x103   : > { %671 = vmatpush.msrb.mxu1 %v575_v62  ;;  %1162 = vmatpush.msrb.mxu3 %v575_v62 }
 0x104   : > { %628 = vmatpush.msrb.mxu0 %v1487_v12  ;;  %1156 = vmatpush.msrb.mxu2 %v1487_v12  ;;  %v709_v12 = vmul.f32 0.0013717421, %v1428_v29  ;;  %v1577_v29 = vmul.f32 0.0013717421, %v1445_v39  ;;  %v1597_v39 = vmul.f32 %v1589_v22, %v1586_v40 }
 0x105   : > { %672 = vmatpush.msrb.mxu1 %v572_v63  ;;  %1163 = vmatpush.msrb.mxu3 %v572_v63 }
 0x106   : > { %629 = vmatpush.msrb.mxu0 %v1483_v6  ;;  %1157 = vmatpush.msrb.mxu2 %v1483_v6  ;;  %v222_v6 = vld [vmem:[%s1691_s2 + $0x30] sm:$0xff]  ;;  %v733_v14 = vmul.f32 %v713_v13, %v709_v12  ;;  %v783_v37 = vmul.f32 %v1577_v29, %v1577_v29  ;;  %v757_v46 = vmul.f32 %v709_v12, %v709_v12 }
 0x107   : > { %673 = vmatpush.msrb.mxu1 %v570_v1  ;;  %1164 = vmatpush.msrb.mxu3 %v570_v1 }
 0x108   : > { %630 = vmatpush.msrb.mxu0 %v1479_v0  ;;  %1158 = vmatpush.msrb.mxu2 %v1479_v0  ;;  %v217_v0 = vld [vmem:[%s1691_s2 + $0x8] sm:$0xff]  ;;  %v787_v54 = vmul.f32 729.0, %v783_v37  ;;  %v761_v61 = vmul.f32 729.0, %v757_v46  ;;  %v737_v63 = vmul.f32 729.0, %v733_v14 }
 0x109   : > { %674 = vmatpush.msrb.mxu1 %v567_v2  ;;  %1165 = vmatpush.msrb.mxu3 %v567_v2 }
 0x10a   : > { %1093 = vmatmul.msk.f32.vlgmr.msrb.gmra.mxu0 %vm584_vm0, %v216_v3  ;;  %1098 = vmatmul.msk.f32.vlgmr.msrb.gmra.mxu2 %vm584_vm0, %v221_v5 }
 0x10b   : > { %675 = vmatpush.msrb.mxu1 %v1489_v16  ;;  %1166 = vmatpush.msrb.mxu3 %v1489_v16  ;;  %v1562_v16 = vmul.f32 0.0013717421, %v1432_v33  ;;  %v1583_v33 = vmul.f32 %v1577_v29, %v1574_v21 }
 0x10d   : > { %676 = vmatpush.msrb.mxu1 %v1485_v10  ;;  %1167 = vmatpush.msrb.mxu3 %v1485_v10  ;;  %v220_v10 = vld [vmem:[%s1691_s2 + $0x20] sm:$0xff]  ;;  %v1569_v18 = vmul.f32 %v1565_v17, %v1562_v16 }
 0x10f   : > { %677 = vmatpush.msrb.mxu1 %v1481_v4  ;;  %1168 = vmatpush.msrb.mxu3 %v1481_v4  ;;  %v218_v4 = vld [vmem:[%s1691_s2 + $0x10] sm:$0xff]  ;;  %v738_v41 = vmul.f32 729.0, %v1569_v18 }
 0x110   : > { %1103 = vmatmul.msk.f32.vlgmr.msrb.gmra.mxu1 %vm584_vm0, %v216_v3  ;;  %1108 = vmatmul.msk.f32.vlgmr.msrb.gmra.mxu3 %vm584_vm0, %v221_v5  ;;  %v758_v5 = vmul.f32 %v1562_v16, %v1562_v16 }
 0x112   : > { %1094 = vmatmul.msk.f32.gmra.mxu0 %vm584_vm0, %v217_v0  ;;  %1099 = vmatmul.msk.f32.gmra.mxu2 %vm584_vm0, %v222_v6 }
 0x118   : > { %1104 = vmatmul.msk.f32.gmra.mxu1 %vm584_vm0, %v217_v0  ;;  %1109 = vmatmul.msk.f32.gmra.mxu3 %vm584_vm0, %v222_v6 }
 0x11a   : > { %1095 = vmatmul.msk.f32.gmra.mxu0 %vm584_vm0, %v218_v4  ;;  %1100 = vmatmul.msk.f32.gmra.mxu2 %vm584_vm0, %v223_v7 }
 0x120   : > { %1105 = vmatmul.msk.f32.gmra.mxu1 %vm584_vm0, %v218_v4  ;;  %1110 = vmatmul.msk.f32.gmra.mxu3 %vm584_vm0, %v223_v7 }
 0x122   : > { %1096 = vmatmul.msk.f32.gmra.mxu0 %vm584_vm0, %v219_v8  ;;  %1101 = vmatmul.msk.f32.gmra.mxu2 %vm584_vm0, %v224_v9 }
 0x128   : > { %1106 = vmatmul.msk.f32.gmra.mxu1 %vm584_vm0, %v219_v8  ;;  %1111 = vmatmul.msk.f32.gmra.mxu3 %vm584_vm0, %v224_v9 }
 0x12a   : > { %1097 = vmatmul.msk.f32.gmra.mxu0 %vm584_vm0, %v220_v10  ;;  %1102 = vmatmul.msk.f32.gmra.mxu2 %vm584_vm0, %v225_v11 }
 0x130   : > { %1107 = vmatmul.msk.f32.gmra.mxu1 %vm584_vm0, %v220_v10  ;;  %1112 = vmatmul.msk.f32.gmra.mxu3 %vm584_vm0, %v225_v11 }
 0x187   : > { %v632_v15 = vpop.f32.mrf.mxu0 }
 0x188   : > { %v745_v47 = vmul.f32 2.0, %v632_v15  ;;  %v717_v60 = vmul.f32 %v713_v13, %v632_v15  ;;  %v788_v15 = vmul.f32 729.0, %v784_v59 }
 0x18a   : > { %v749_v0 = vmul.f32 %v745_v47, %v709_v12 }
 0x18d   : > { %v1571_v19 = vpop.f32.mrf.mxu1  ;;  %v647_v20 = vpop.f32.mrf.mxu2 }
 0x18e   : > { %v746_v10 = vmul.f32 2.0, %v1571_v19 }
 0x18f   : > { %v1579_v38 = vpop.f32.mrf.mxu0 }
 0x190   : > { %v747_v26 = vmul.f32 2.0, %v1579_v38  ;;  %v719_v18 = vmul.f32 %v1577_v29, %v1579_v38 }
 0x192   : > { %v751_v31 = vmul.f32 %v747_v26, %v1574_v21 }
 0x193   : > { %v1591_v23 = vpop.f32.mrf.mxu3 }
 0x194   : > { %v755_v48 = vsub.f32 %v647_v20, %v751_v31  ;;  %v718_v31 = vmul.f32 %v1565_v17, %v1571_v19 }
 0x195   : > { %v1593_v24 = vpop.f32.mrf.mxu1  ;;  %v650_v30 = vpop.f32.mrf.mxu2 }
 0x196   : > { %v748_v42 = vmul.f32 2.0, %v1593_v24  ;;  %v767_v1 = vadd.f32 %v763_v49, %v755_v48  ;;  %v720_v59 = vmul.f32 %v1589_v22, %v1593_v24 }
 0x197   : > { %v638_v25 = vpop.f32.mrf.mxu0 }
 0x198   : > { %v769_v34 = vmul.f32 2.0, %v638_v25  ;;  %v752_v56 = vmul.f32 %v748_v42, %v1586_v40  ;;  %v725_v4 = vmul.f32 %v709_v12, %v638_v25  ;;  %v762_v25 = vmul.f32 729.0, %v758_v5 }
 0x19a   : > { %v773_v50 = vmul.f32 %v769_v34, %v713_v13  ;;  %v756_v11 = vsub.f32 %v1591_v23, %v752_v56 }
 0x19b   : > { %v1600_v27 = vpop.f32.mrf.mxu3 }
 0x19c   : > { %v777_v3 = vsub.f32 %v650_v30, %v773_v50  ;;  %v768_v42 = vadd.f32 %v764_v51, %v756_v11 }
 0x19d   : > { %v685_v28 = vpop.f32.mrf.mxu1  ;;  %v653_v32 = vpop.f32.mrf.mxu2 }
 0x19e   : > { %v770_v55 = vmul.f32 2.0, %v685_v28  ;;  %v789_v12 = vadd.f32 %v785_v57, %v777_v3  ;;  %v726_v37 = vmul.f32 %v1562_v16, %v685_v28  ;;  %v740_v3 = vmul.f32 729.0, %v1597_v39 }
 0x19f   : > { %v1612_v43 = vpop.f32.mrf.mxu0 }
 0x1a0   : > { %v771_v45 = vmul.f32 2.0, %v1612_v43  ;;  %v774_v13 = vmul.f32 %v770_v55, %v1565_v17  ;;  %v739_v55 = vmul.f32 729.0, %v1583_v33 }
 0x1a2   : > { %v775_v53 = vmul.f32 %v771_v45, %v1577_v29  ;;  %v778_v44 = vsub.f32 %v1600_v27, %v774_v13  ;;  %v750_v45 = vmul.f32 %v746_v10, %v1562_v16  ;;  %v727_v27 = vmul.f32 %v1574_v21, %v1612_v43 }
 0x1a3   : > { %v700_v58 = vpop.f32.mrf.mxu3 }
 0x1a4   : > { %v779_v62 = vsub.f32 %v653_v32, %v775_v53  ;;  %v790_v51 = vadd.f32 %v786_v52, %v778_v44 }
 0x1a5   : > { %v688_v2 = vpop.f32.mrf.mxu1  ;;  %v656_v6 = vpop.f32.mrf.mxu2 }
 0x1a6   : > { %v772_v7 = vmul.f32 2.0, %v688_v2  ;;  %v791_v8 = vadd.f32 %v787_v54, %v779_v62  ;;  %v721_v9 = vsub.f32 %v656_v6, %v717_v60 }
 0x1a7   : > { %v644_v14 = vpop.f32.mrf.mxu0 }
 0x1a8   : > { %v776_v20 = vmul.f32 %v772_v7, %v1589_v22  ;;  %v753_v30 = vsub.f32 %v644_v14, %v749_v0  ;;  %v799_v26 = vmul.f32 %v791_v8, %v767_v1  ;;  %v729_v34 = vsub.f32 %v721_v9, %v725_v4 }
 0x1aa   : > { %v780_v32 = vsub.f32 %v700_v58, %v776_v20  ;;  %v765_v35 = vadd.f32 %v761_v61, %v753_v30  ;;  %v1628_v36 = vadd.f32 1e-05, %v799_v26  ;;  %v741_v23 = vadd.f32 %v737_v63, %v729_v34 }
 0x1ab   : > { %v703_v46 = vpop.f32.mrf.mxu3  ;;  %v728_v63 = vmul.f32 %v1586_v40, %v688_v2 }
 0x1ac   : > { %v792_v47 = vadd.f32 %v788_v15, %v780_v32  ;;  %v797_v48 = vmul.f32 %v789_v12, %v765_v35  ;;  %1177 = vrcp.f32 %v1628_v36  ;;  %v722_v17 = vsub.f32 %v703_v46, %v718_v31 }
 0x1ad   : > { %v691_v19 = vpop.f32.mrf.mxu1  ;;  %v659_v49 = vpop.f32.mrf.mxu2  ;;  %v844_v62 = vand.u32 2147483647, %v1628_v36  ;;  %v846_v5 = vand.u32 2147483648, %v1628_v36  ;;  %v793_v0 = vmul.f32 %v741_v23, %v741_v23  ;;  %vm840_vm1 = vweird.f32 %v1628_v36 }
 0x1ae   : > { %v754_v50 = vsub.f32 %v691_v19, %v750_v45  ;;  %v800_v53 = vmul.f32 %v792_v47, %v768_v42  ;;  %v801_v54 = vadd.f32 1e-05, %v797_v48  ;;  %v730_v28 = vsub.f32 %v722_v17, %v726_v37 }
 0x1af   : > { %v723_v16 = vsub.f32 %v659_v49, %v719_v18  ;;  %vm1655_vm3 = vcmp.eq.f32.partialorder %v844_v62, 8.507059e+37  ;;  %v847_v10 = vor.u32 1.1754944e-38, %v846_v5 }
 0x1b0   : > { %v766_v56 = vadd.f32 %v762_v25, %v754_v50  ;;  %v1639_v57 = vadd.f32 1e-05, %v800_v53  ;;  %1179 = vrcp.f32 %v801_v54  ;;  %v1641_v58 = vadd.f32 %v738_v41, %v730_v28 }
 0x1b1   : > { %v731_v29 = vsub.f32 %v723_v16, %v727_v27  ;;  %v814_v7 = vand.u32 2147483647, %v801_v54  ;;  %vm810_vm4 = vweird.f32 %v801_v54  ;;  %v816_v11 = vand.u32 2147483648, %v801_v54 }
 0x1b2   : > { %v1178_v38 = vpop.eup %1177  ;;  %v798_v60 = vmul.f32 %v790_v51, %v766_v56  ;;  %1181 = vrcp.f32 %v1639_v57  ;;  %v859_v13 = vand.u32 2147483647, %v1639_v57  ;;  %vm855_vm6 = vweird.f32 %v1639_v57 }
 0x1b3   : > { %v836_v52 = vmul.f32 %v1178_v38, %v1628_v36  ;;  %v706_v21 = vpop.f32.mrf.mxu3  ;;  %v743_v61 = vadd.f32 %v739_v55, %v731_v29  ;;  %vm841_vm2 = vweird.f32 %v1178_v38  ;;  %vm1664_vm8 = vcmp.eq.f32.partialorder %v814_v7, 8.507059e+37 }
 0x1b4   : > { %v1647_v43 = vadd.f32 1e-05, %v798_v60  ;;  %v724_v33 = vsub.f32 %v706_v21, %v720_v59  ;;  %vm842_vm7 = vmor %vm840_vm1, %vm841_vm2  ;;  %v861_v34 = vand.u32 2147483648, %v1639_v57  ;;  %v817_v36 = vor.u32 1.1754944e-38, %v816_v11 }
 0x1b5   : > { %v837_v1 = vsub.f32 1.0, %v836_v52  ;;  %v795_v31 = vmul.f32 %v743_v61, %v743_v61  ;;  %vm860_vm11 = vcmp.eq.f32.partialorder %v859_v13, 8.507059e+37  ;;  %v794_v27 = vmul.f32 %v1641_v58, %v1641_v58 }
 0x1b6   : > { %v1180_v22 = vpop.eup %1179  ;;  %1183 = vrcp.f32 %v1647_v43  ;;  %v732_v6 = vsub.f32 %v724_v33, %v728_v63  ;;  %v829_v35 = vand.u32 2147483647, %v1647_v43  ;;  %v831_v46 = vand.u32 2147483648, %v1647_v43 }
 0x1b7   : > { %v806_v24 = vmul.f32 %v1180_v22, %v801_v54  ;;  %v838_v8 = vmul.f32 %v1178_v38, %v837_v1  ;;  %vm811_vm5 = vweird.f32 %v1180_v22  ;;  %v862_v17 = vor.u32 1.1754944e-38, %v861_v34 }
 0x1b8   : > { %v1182_v4 = vpop.eup %1181  ;;  %v744_v2 = vadd.f32 %v740_v3, %v732_v6  ;;  %vm812_vm10 = vmor %vm810_vm4, %vm811_vm5  ;;  %vm825_vm14 = vweird.f32 %v1647_v43  ;;  %v832_v51 = vor.u32 1.1754944e-38, %v831_v46  ;;  %vm830_vm0 = vcmp.eq.f32.partialorder %v829_v35, 8.507059e+37 }
 0x1b9   : > { %v851_v40 = vmul.f32 %v1182_v4, %v1639_v57  ;;  %v807_v39 = vsub.f32 1.0, %v806_v24  ;;  %v839_v15 = vadd.f32 %v1178_v38, %v838_v8  ;;  %vm856_vm9 = vweird.f32 %v1182_v4 }
 0x1ba   : > { %v796_v48 = vmul.f32 %v744_v2, %v744_v2  ;;  %vm857_vm12 = vmor %vm855_vm6, %vm856_vm9  ;;  %v885_v63 = vlaneseq  ;;  %vm882_vm1 = vcmask 1040384  }
 0x1bb   : > { %v852_v14 = vsub.f32 1.0, %v851_v40  ;;  %v808_v20 = vmul.f32 %v1180_v22, %v807_v39  ;;  %v843_v12 = vsel %vm842_vm7, %v1178_v38, %v839_v15 }
 0x1bc   : > { %v1184_v30 = vpop.eup %1183  ;;  %v848_v23 = vsel %vm1655_vm3, %v847_v10, %v843_v12  ;;  %vm887_vm2 = vcmp.lt.s32.totalorder %v885_v63, 256 }
 0x1bd   : > { %v821_v25 = vmul.f32 %v1184_v30, %v1647_v43  ;;  %v809_v41 = vadd.f32 %v1180_v22, %v808_v20  ;;  %v853_v32 = vmul.f32 %v1182_v4, %v852_v14  ;;  %v849_v45 = vmul.f32 %v848_v23, %v795_v31 }
 0x1be   : > { %vm826_vm13 = vweird.f32 %v1184_v30 }
 0x1bf   : > { %v822_v37 = vsub.f32 1.0, %v821_v25  ;;  %v813_v42 = vsel %vm812_vm10, %v1180_v22, %v809_v41  ;;  %v854_v44 = vadd.f32 %v1182_v4, %v853_v32  ;;  %vm827_vm15 = vmor %vm825_vm14, %vm826_vm13 }
 0x1c0   : > { %v818_v47 = vsel %vm1664_vm8, %v817_v36, %v813_v42 }
 0x1c1   : > { %v823_v18 = vmul.f32 %v1184_v30, %v822_v37  ;;  %v819_v19 = vmul.f32 %v818_v47, %v793_v0  ;;  %v858_v49 = vsel %vm857_vm12, %v1182_v4, %v854_v44 }
 0x1c2   : > { %v863_v50 = vsel %vm860_vm11, %v862_v17, %v858_v49 }
 0x1c3   : > { %v824_v53 = vadd.f32 %v1184_v30, %v823_v18  ;;  %v864_v54 = vmul.f32 %v863_v50, %v796_v48  ;;  %v865_v28 = vadd.f32 %v849_v45, %v819_v19 }
 0x1c5   : > { %v828_v16 = vsel %vm827_vm15, %v1184_v30, %v824_v53  ;;  %v866_v55 = vrot.slane %v865_v28, 4 }
 0x1c6   : > { %v833_v56 = vsel %vm830_vm0, %v832_v51, %v828_v16 }
 0x1c7   : > { %v834_v57 = vmul.f32 %v833_v56, %v794_v27  ;;  %v867_v29 = vadd.f32 %v866_v55, %v865_v28 }
 0x1c9   : > { %v872_v38 = vadd.f32 %v864_v54, %v834_v57  ;;  %v868_v60 = vrot.slane %v867_v29, 2 }
 0x1cb   : > { %v873_v59 = vrot.slane %v872_v38, 4  ;;  %v869_v43 = vadd.f32 %v868_v60, %v867_v29 }
 0x1cd   : > { %v874_v52 = vadd.f32 %v873_v59, %v872_v38  ;;  %v870_v62 = vrot.slane %v869_v43, 1 }
 0x1cf   : > { %v875_v21 = vrot.slane %v874_v52, 2  ;;  %v871_v3 = vadd.f32 %v870_v62, %v869_v43 }
 0x1d1   : > { %v876_v33 = vadd.f32 %v875_v21, %v874_v52 }
 0x1d3   : > { %v877_v61 = vrot.slane %v876_v33, 1 }
 0x1d5   : > { %v878_v1 = vadd.f32 %v877_v61, %v876_v33 }
 0x1d7   : > { %v881_v58 = vrot.slane %v878_v1, 7 }
 0x1d9   : > { %v883_v5 = vsel %vm882_vm1, %v871_v3, %v881_v58 }
 0x1da   : > { %889 = vst.msk [vmem:[%s215_s5] sm:$0x3] %vm887_vm2, %v883_v5 }
 0x1db PF: > { %s14_s15 = sadd.s32 1, %s1191_s15  }
 0x1dc   : > { %p11_p4 = scmp.ge.s32.totalorder %s14_s15, 4  }
 0x1de   :  { %13 = sbr.rel (!%p11_p4) target bundleno = 1 (0x1), region = 69 }

</bundles_post_ra>
